<compile_context>
chip_gen: v7x
topology: tpu7x:2x2x1
jax: 0.10.0
libtpu: 0.0.40
codegen_flags: <defaults>
</compile_context>

<pallas_src>
import jax
import jax.numpy as jnp
from jax.experimental import pallas as pl
from jax.experimental.pallas import tpu as pltpu

LN_EPS = 1e-5


def mlp_kernel(x_ref, w1_ref, b1_ref, w2_ref, b2_ref,
               w3_ref, b3_ref, w4_ref, b4_ref, o_ref):
    cd = w1_ref.dtype  # matmul operand dtype (f32 or bf16); accumulation is f32

    # ---- LayerNorm over features (features on sublanes, batch on lanes) ----
    x = x_ref[...]                                            # (6, tm) f32
    mu = jnp.mean(x, axis=0, keepdims=True)                   # (1, tm)
    var = jnp.mean((x - mu) * (x - mu), axis=0, keepdims=True)
    xn = (x - mu) * jax.lax.rsqrt(var + LN_EPS)               # (6, tm)
    # gamma/beta already folded into w1/b1 by the wrapper.

    # ---- Linear(6,64) + ReLU   (Dropout = identity in eval) ----
    h = jnp.dot(w1_ref[...], xn.astype(cd),
                preferred_element_type=jnp.float32) + b1_ref[...]   # (64, tm)
    h = jnp.maximum(h, 0.0)

    # ---- Linear(64,64) + ReLU ----
    h = jnp.dot(w2_ref[...], h.astype(cd),
                preferred_element_type=jnp.float32) + b2_ref[...]
    h = jnp.maximum(h, 0.0)

    # ---- Linear(64,64) + ReLU ----
    h = jnp.dot(w3_ref[...], h.astype(cd),
                preferred_element_type=jnp.float32) + b3_ref[...]
    h = jnp.maximum(h, 0.0)

    # ---- Linear(64,1) + Sigmoid  -> lane-dense (1, tm) output ----
    y = jnp.dot(w4_ref[...], h.astype(cd),
                preferred_element_type=jnp.float32) + b4_ref[...]   # (1, tm)
    o_ref[...] = jax.nn.sigmoid(y).astype(o_ref.dtype)


def _round_up(n, m):
    return ((n + m - 1) // m) * m


def test_model_forward(x, params, *, tm=512, compute_dtype=jnp.float32):
    """x: (B, 6) float32 -> (B, 1) float32.

    tm: batch-lane tile (multiple of 128). compute_dtype=jnp.bfloat16 enables
    bf16 MXU inputs (f32 accumulation) on v6e/v7x; default f32 is bit-faithful.
    """
    B, F = x.shape
    assert F == 6
    g, beta, w1, b1, w2, b2, w3, b3, w4, b4 = params  # weights in (out, in)

    # Fold LayerNorm affine into the first Linear (accuracy-neutral for the
    # default gamma=1/beta=0 init, algebraically exact in general).
    w1f = w1 * g[None, :]                       # (64, 6)
    b1f = jnp.dot(w1, beta[:, None]) + b1       # (64, 1)

    cd = compute_dtype
    w1c, w2c, w3c, w4c = (w.astype(cd) for w in (w1f, w2, w3, w4))

    # Lane tile: multiple of 128, no larger than needed; split into >=2 grid
    # steps when possible so both v7x TensorCores get work.
    tm_eff = max(128, min(_round_up(tm, 128), _round_up(B, 128)))
    if _round_up(B, tm_eff) == tm_eff and tm_eff > 128:
        tm_eff = max(128, _round_up(tm_eff // 2, 128))
    B_pad = _round_up(B, tm_eff)

    # Batch-on-lane layout: (6, B_pad) input slab, (1, B_pad) output slab.
    xt = jnp.zeros((6, B_pad), jnp.float32).at[:, :B].set(x.T)

    rep = lambda shape: pl.BlockSpec(shape, lambda i: (0, 0))  # replicated params

    out = pl.pallas_call(
        mlp_kernel,
        out_shape=jax.ShapeDtypeStruct((1, B_pad), jnp.float32),
        grid_spec=pltpu.PrefetchScalarGridSpec(
            num_scalar_prefetch=0,
            grid=(B_pad // tm_eff,),
            in_specs=[
                pl.BlockSpec((6, tm_eff), lambda i: (0, i)),   # x tile
                rep((64, 6)),  rep((64, 1)),                   # W1 (LN-folded), b1
                rep((64, 64)), rep((64, 1)),                   # W2, b2
                rep((64, 64)), rep((64, 1)),                   # W3, b3
                rep((1, 64)),  rep((1, 1)),                    # W4, b4
            ],
            out_specs=pl.BlockSpec((1, tm_eff), lambda i: (0, i)),
        ),
        compiler_params=pltpu.CompilerParams(
            dimension_semantics=("parallel",)),
    )(xt, w1c, b1f, w2c, b2, w3c, b3, w4c, b4)

    return out[:, :B].reshape(B, 1)   # (1,B) -> (B,1) is a free reshape


def init_params(key):
    """Deterministic init mirroring the PyTorch module (weights stored (out,in))."""
    ks = jax.random.split(key, 8)

    def linear(kw, kb, fan_in, fan_out):
        bound = 1.0 / jnp.sqrt(fan_in)
        w = jax.random.uniform(kw, (fan_out, fan_in), jnp.float32, -bound, bound)
        b = jax.random.uniform(kb, (fan_out, 1), jnp.float32, -bound, bound)
        return w, b

    g = jnp.ones((6,), jnp.float32)      # LayerNorm weight
    beta = jnp.zeros((6,), jnp.float32)  # LayerNorm bias
    w1, b1 = linear(ks[0], ks[1], 6, 64)
    w2, b2 = linear(ks[2], ks[3], 64, 64)
    w3, b3 = linear(ks[4], ks[5], 64, 64)
    w4, b4 = linear(ks[6], ks[7], 64, 1)
    return (g, beta, w1, b1, w2, b2, w3, b3, w4, b4)


def reference_forward(x, params):
    (g, beta, w1, b1, w2, b2, w3, b3, w4, b4) = params
    mu = jnp.mean(x, axis=-1, keepdims=True)
    var = jnp.mean((x - mu) ** 2, axis=-1, keepdims=True)
    h = (x - mu) / jnp.sqrt(var + LN_EPS) * g + beta
    h = jnp.maximum(h @ w1.T + b1[:, 0], 0.0)
    h = jnp.maximum(h @ w2.T + b2[:, 0], 0.0)
    h = jnp.maximum(h @ w3.T + b3[:, 0], 0.0)
    return jax.nn.sigmoid(h @ w4.T + b4[:, 0])


if __name__ == "__main__":
    key = jax.random.PRNGKey(0)
    kx, kp = jax.random.split(key)

    B = 16
    x = jax.random.normal(kx, (B, 6), jnp.float32)
    params = init_params(kp)

    out = jax.block_until_ready(test_model_forward(x, params))
    ref = reference_forward(x, params)

    assert out.shape == (B, 1), out.shape
    err = float(jnp.max(jnp.abs(out - ref)))
    assert jnp.allclose(out, ref, atol=1e-5, rtol=1e-5), err
    print("KERNEL_OK")
</pallas_src>

<mosaic_0001>
module attributes {stable_mosaic.version = 11 : i64} {
  func.func @mlp_kernel(%arg0: i32, %arg1: memref<6x128xf32, #tpu.memory_space<vmem>>, %arg2: memref<64x6xf32, #tpu.memory_space<vmem>>, %arg3: memref<64x1xf32, #tpu.memory_space<vmem>>, %arg4: memref<64x64xf32, #tpu.memory_space<vmem>>, %arg5: memref<64x1xf32, #tpu.memory_space<vmem>>, %arg6: memref<64x64xf32, #tpu.memory_space<vmem>>, %arg7: memref<64x1xf32, #tpu.memory_space<vmem>>, %arg8: memref<1x64xf32, #tpu.memory_space<vmem>>, %arg9: memref<1x1xf32, #tpu.memory_space<vmem>>, %arg10: memref<1x128xf32, #tpu.memory_space<vmem>>) attributes {dimension_semantics = [#tpu.dimension_semantics<parallel>], iteration_bounds = array<i64: 1>, scalar_prefetch = 0 : i64, scratch_operands = 0 : i64, tpu.core_type = #tpu.core_type<tc>, window_params = [{transform_indices = @transform_0, window_bounds = array<i64: 6, 128>}, {pipeline_mode = #tpu.pipeline_mode<synchronous>, transform_indices = @transform_1, window_bounds = array<i64: 64, 6>}, {pipeline_mode = #tpu.pipeline_mode<synchronous>, transform_indices = @transform_2, window_bounds = array<i64: 64, 1>}, {pipeline_mode = #tpu.pipeline_mode<synchronous>, transform_indices = @transform_3, window_bounds = array<i64: 64, 64>}, {pipeline_mode = #tpu.pipeline_mode<synchronous>, transform_indices = @transform_4, window_bounds = array<i64: 64, 1>}, {pipeline_mode = #tpu.pipeline_mode<synchronous>, transform_indices = @transform_5, window_bounds = array<i64: 64, 64>}, {pipeline_mode = #tpu.pipeline_mode<synchronous>, transform_indices = @transform_6, window_bounds = array<i64: 64, 1>}, {pipeline_mode = #tpu.pipeline_mode<synchronous>, transform_indices = @transform_7, window_bounds = array<i64: 1, 64>}, {pipeline_mode = #tpu.pipeline_mode<synchronous>, transform_indices = @transform_8, window_bounds = array<i64: 1, 1>}, {transform_indices = @transform_9, window_bounds = array<i64: 1, 128>}]} {
    %c0 = arith.constant 0 : index
    %c0_0 = arith.constant 0 : index
    %0 = vector.load %arg1[%c0, %c0_0] : memref<6x128xf32, #tpu.memory_space<vmem>>, vector<6x128xf32>
    %cst = arith.constant dense<0.000000e+00> : vector<128xf32>
    %1 = vector.multi_reduction <add>, %0, %cst [0] : vector<6x128xf32> to vector<128xf32>
    %2 = vector.shape_cast %1 : vector<128xf32> to vector<1x128xf32>
    %cst_1 = arith.constant 6.000000e+00 : f32
    %3 = vector.broadcast %cst_1 : f32 to vector<1x128xf32>
    %4 = arith.divf %2, %3 : vector<1x128xf32>
    %5 = vector.broadcast %4 : vector<1x128xf32> to vector<6x128xf32>
    %6 = arith.subf %0, %5 : vector<6x128xf32>
    %7 = vector.broadcast %4 : vector<1x128xf32> to vector<6x128xf32>
    %8 = arith.subf %0, %7 : vector<6x128xf32>
    %9 = arith.mulf %6, %8 : vector<6x128xf32>
    %cst_2 = arith.constant dense<0.000000e+00> : vector<128xf32>
    %10 = vector.multi_reduction <add>, %9, %cst_2 [0] : vector<6x128xf32> to vector<128xf32>
    %11 = vector.shape_cast %10 : vector<128xf32> to vector<1x128xf32>
    %cst_3 = arith.constant 6.000000e+00 : f32
    %12 = vector.broadcast %cst_3 : f32 to vector<1x128xf32>
    %13 = arith.divf %11, %12 : vector<1x128xf32>
    %14 = vector.broadcast %4 : vector<1x128xf32> to vector<6x128xf32>
    %15 = arith.subf %0, %14 : vector<6x128xf32>
    %cst_4 = arith.constant 9.99999974E-6 : f32
    %16 = vector.broadcast %cst_4 : f32 to vector<1x128xf32>
    %17 = arith.addf %13, %16 : vector<1x128xf32>
    %18 = math.rsqrt %17 : vector<1x128xf32>
    %19 = vector.broadcast %18 : vector<1x128xf32> to vector<6x128xf32>
    %20 = arith.mulf %15, %19 : vector<6x128xf32>
    %c0_5 = arith.constant 0 : index
    %c0_6 = arith.constant 0 : index
    %21 = vector.load %arg2[%c0_5, %c0_6] : memref<64x6xf32, #tpu.memory_space<vmem>>, vector<64x6xf32>
    %cst_7 = arith.constant dense<0.000000e+00> : vector<64x128xf32>
    %22 = tpu.matmul %21, %20, %cst_7 {dimension_numbers = #tpu.dot_dimension_numbers<[1], [0], [0], [1], [0, 0, 1, 1], [], []>} : vector<64x6xf32>, vector<6x128xf32>, vector<64x128xf32> -> vector<64x128xf32>
    %c0_8 = arith.constant 0 : index
    %c0_9 = arith.constant 0 : index
    %23 = vector.load %arg3[%c0_8, %c0_9] : memref<64x1xf32, #tpu.memory_space<vmem>>, vector<64x1xf32>
    %24 = vector.broadcast %23 : vector<64x1xf32> to vector<64x128xf32>
    %25 = arith.addf %22, %24 : vector<64x128xf32>
    %cst_10 = arith.constant 0.000000e+00 : f32
    %26 = vector.broadcast %cst_10 : f32 to vector<64x128xf32>
    %27 = arith.maximumf %25, %26 : vector<64x128xf32>
    %c0_11 = arith.constant 0 : index
    %c0_12 = arith.constant 0 : index
    %28 = vector.load %arg4[%c0_11, %c0_12] : memref<64x64xf32, #tpu.memory_space<vmem>>, vector<64x64xf32>
    %cst_13 = arith.constant dense<0.000000e+00> : vector<64x128xf32>
    %29 = tpu.matmul %28, %27, %cst_13 {dimension_numbers = #tpu.dot_dimension_numbers<[1], [0], [0], [1], [0, 0, 1, 1], [], []>} : vector<64x64xf32>, vector<64x128xf32>, vector<64x128xf32> -> vector<64x128xf32>
    %c0_14 = arith.constant 0 : index
    %c0_15 = arith.constant 0 : index
    %30 = vector.load %arg5[%c0_14, %c0_15] : memref<64x1xf32, #tpu.memory_space<vmem>>, vector<64x1xf32>
    %31 = vector.broadcast %30 : vector<64x1xf32> to vector<64x128xf32>
    %32 = arith.addf %29, %31 : vector<64x128xf32>
    %cst_16 = arith.constant 0.000000e+00 : f32
    %33 = vector.broadcast %cst_16 : f32 to vector<64x128xf32>
    %34 = arith.maximumf %32, %33 : vector<64x128xf32>
    %c0_17 = arith.constant 0 : index
    %c0_18 = arith.constant 0 : index
    %35 = vector.load %arg6[%c0_17, %c0_18] : memref<64x64xf32, #tpu.memory_space<vmem>>, vector<64x64xf32>
    %cst_19 = arith.constant dense<0.000000e+00> : vector<64x128xf32>
    %36 = tpu.matmul %35, %34, %cst_19 {dimension_numbers = #tpu.dot_dimension_numbers<[1], [0], [0], [1], [0, 0, 1, 1], [], []>} : vector<64x64xf32>, vector<64x128xf32>, vector<64x128xf32> -> vector<64x128xf32>
    %c0_20 = arith.constant 0 : index
    %c0_21 = arith.constant 0 : index
    %37 = vector.load %arg7[%c0_20, %c0_21] : memref<64x1xf32, #tpu.memory_space<vmem>>, vector<64x1xf32>
    %38 = vector.broadcast %37 : vector<64x1xf32> to vector<64x128xf32>
    %39 = arith.addf %36, %38 : vector<64x128xf32>
    %cst_22 = arith.constant 0.000000e+00 : f32
    %40 = vector.broadcast %cst_22 : f32 to vector<64x128xf32>
    %41 = arith.maximumf %39, %40 : vector<64x128xf32>
    %c0_23 = arith.constant 0 : index
    %c0_24 = arith.constant 0 : index
    %42 = vector.load %arg8[%c0_23, %c0_24] : memref<1x64xf32, #tpu.memory_space<vmem>>, vector<1x64xf32>
    %cst_25 = arith.constant dense<0.000000e+00> : vector<1x128xf32>
    %43 = tpu.matmul %42, %41, %cst_25 {dimension_numbers = #tpu.dot_dimension_numbers<[1], [0], [0], [1], [0, 0, 1, 1], [], []>} : vector<1x64xf32>, vector<64x128xf32>, vector<1x128xf32> -> vector<1x128xf32>
    %c0_26 = arith.constant 0 : index
    %c0_27 = arith.constant 0 : index
    %44 = vector.load %arg9[%c0_26, %c0_27] : memref<1x1xf32, #tpu.memory_space<vmem>>, vector<1x1xf32>
    %45 = vector.broadcast %44 : vector<1x1xf32> to vector<1x128xf32>
    %46 = arith.addf %43, %45 : vector<1x128xf32>
    %47 = arith.negf %46 : vector<1x128xf32>
    %48 = math.exp %47 : vector<1x128xf32>
    %cst_28 = arith.constant 1.000000e+00 : f32
    %49 = vector.broadcast %cst_28 : f32 to vector<1x128xf32>
    %50 = arith.addf %49, %48 : vector<1x128xf32>
    %51 = arith.divf %49, %50 : vector<1x128xf32>
    %c0_29 = arith.constant 0 : index
    %c0_30 = arith.constant 0 : index
    %52 = vector.load %arg10[%c0_29, %c0_30] : memref<1x128xf32, #tpu.memory_space<vmem>>, vector<1x128xf32>
    tpu.vector_store %arg10[%c0_29, %c0_30], %51 {strides = array<i32>} : memref<1x128xf32, #tpu.memory_space<vmem>>, vector<1x128xf32>,
    return
  }
  func.func @transform_0(%arg0: i32) -> (i32, i32) {
    %c0_i32 = arith.constant 0 : i32
    %c0_i32_0 = arith.constant 0 : i32
    return %c0_i32, %arg0 : i32, i32
  }
  func.func @transform_1(%arg0: i32) -> (i32, i32) {
    %c0_i32 = arith.constant 0 : i32
    %c0_i32_0 = arith.constant 0 : i32
    %c0_i32_1 = arith.constant 0 : i32
    return %c0_i32, %c0_i32_0 : i32, i32
  }
  func.func @transform_2(%arg0: i32) -> (i32, i32) {
    %c0_i32 = arith.constant 0 : i32
    %c0_i32_0 = arith.constant 0 : i32
    %c0_i32_1 = arith.constant 0 : i32
    return %c0_i32, %c0_i32_0 : i32, i32
  }
  func.func @transform_3(%arg0: i32) -> (i32, i32) {
    %c0_i32 = arith.constant 0 : i32
    %c0_i32_0 = arith.constant 0 : i32
    %c0_i32_1 = arith.constant 0 : i32
    return %c0_i32, %c0_i32_0 : i32, i32
  }
  func.func @transform_4(%arg0: i32) -> (i32, i32) {
    %c0_i32 = arith.constant 0 : i32
    %c0_i32_0 = arith.constant 0 : i32
    %c0_i32_1 = arith.constant 0 : i32
    return %c0_i32, %c0_i32_0 : i32, i32
  }
  func.func @transform_5(%arg0: i32) -> (i32, i32) {
    %c0_i32 = arith.constant 0 : i32
    %c0_i32_0 = arith.constant 0 : i32
    %c0_i32_1 = arith.constant 0 : i32
    return %c0_i32, %c0_i32_0 : i32, i32
  }
  func.func @transform_6(%arg0: i32) -> (i32, i32) {
    %c0_i32 = arith.constant 0 : i32
    %c0_i32_0 = arith.constant 0 : i32
    %c0_i32_1 = arith.constant 0 : i32
    return %c0_i32, %c0_i32_0 : i32, i32
  }
  func.func @transform_7(%arg0: i32) -> (i32, i32) {
    %c0_i32 = arith.constant 0 : i32
    %c0_i32_0 = arith.constant 0 : i32
    %c0_i32_1 = arith.constant 0 : i32
    return %c0_i32, %c0_i32_0 : i32, i32
  }
  func.func @transform_8(%arg0: i32) -> (i32, i32) {
    %c0_i32 = arith.constant 0 : i32
    %c0_i32_0 = arith.constant 0 : i32
    %c0_i32_1 = arith.constant 0 : i32
    return %c0_i32, %c0_i32_0 : i32, i32
  }
  func.func @transform_9(%arg0: i32) -> (i32, i32) {
    %c0_i32 = arith.constant 0 : i32
    %c0_i32_0 = arith.constant 0 : i32
    return %c0_i32, %arg0 : i32, i32
  }
}

</mosaic_0001>

<bundles_post_ra>
// kernel: tpu_custom_call.1
= control target key start
LH: loop header
LB: loop body
LE: loop exit
PB: predicated region body
PF: predicated region fallthrough
CT: control target
= control target key end

     0   :  { %s1244_s0 = inlined_call_operand.vmem [shape: f32[6,128], index: 0, kind: input, shape index: {}]   ;;  %s1245_s1 = inlined_call_operand.vmem [shape: f32[64,6], index: 1, kind: input, shape index: {}]   ;;  %s1246_s2 = inlined_call_operand.vmem [shape: f32[64,1], index: 2, kind: input, shape index: {}]   ;;  %s1247_s3 = inlined_call_operand.vmem [shape: f32[64,64], index: 3, kind: input, shape index: {}]   ;;  %s1248_s4 = inlined_call_operand.vmem [shape: f32[64,1], index: 4, kind: input, shape index: {}]   ;;  %s1249_s5 = inlined_call_operand.vmem [shape: f32[64,64], index: 5, kind: input, shape index: {}]   ;;  %s1250_s6 = inlined_call_operand.vmem [shape: f32[64,1], index: 6, kind: input, shape index: {}]   ;;  %s1251_s7 = inlined_call_operand.vmem [shape: f32[1,64], index: 7, kind: input, shape index: {}]   ;;  %s1252_s8 = inlined_call_operand.<no memory space> [shape: f32[1,1], index: 8, kind: input, shape index: {}]   ;;  %s1253_s9 = inlined_call_operand.hbm [shape: f32[1,128], index: 9, kind: output, shape index: {}]  }
   0x1   :  { %v14_v0 = vstv %s1252_s8 }
   0x2   :  { %15 = vst [vmem:[#allocation2] sm:$0x1] %v14_v0 }
   0x3   :  { %v35_v1 = vld [vmem:[%s1244_s0] sm:$0x3f]  ;;  %vm36_vm0 = vcmask 1045504   ;;  %vm115_vm1 = vcmask 48128   ;;  %v995_v5 = vmov 0   ;;  %v69_v7 = vld [vmem:[%s1246_s2 + $0x10] sm:$0xff] }
   0x4   :  { %v59_v2 = vld [vmem:[%s1245_s1] sm:$0xff]  ;;  %v37_v3 = vsel %vm36_vm0, %v35_v1, 0.0  ;;  %963 = vset.pattern.permute.xlu0 %v995_v5  ;;  %964 = vset.pattern.permute.xlu1 %v995_v5  ;;  %v68_v9 = vld [vmem:[%s1246_s2 + $0x8] sm:$0xff]  ;;  %v70_v10 = vld [vmem:[%s1246_s2 + $0x18] sm:$0xff] }
   0x5   :  { %827 = vmatprep.mubr.msk.f32.mxu0 %vm115_vm1, %v59_v2  ;;  %v38_v4 = vrot.slane %v37_v3, 4  ;;  %v67_v6 = vld [vmem:[%s1246_s2] sm:$0xff]  ;;  %87 = vperm.xlu1 %964, %v69_v7   ;;  %v72_v14 = vld [vmem:[%s1246_s2 + $0x28] sm:$0xff] }
   0x6   :  { %77 = vperm.xlu0 %963, %v67_v6   ;;  %v71_v13 = vld [vmem:[%s1246_s2 + $0x20] sm:$0xff] }
   0x7   :  { %v39_v8 = vadd.f32 %v38_v4, %v37_v3 }
   0x9   :  { %v40_v11 = vrot.slane %v39_v8, 2  ;;  %92 = vperm.xlu1 %964, %v70_v10  }
   0xa   :  { %82 = vperm.xlu0 %963, %v68_v9  }
   0xb   :  { %v41_v12 = vadd.f32 %v40_v11, %v39_v8 }
   0xd   :  { %v42_v15 = vrot.slane %v41_v12, 1 }
   0xe   :  { %16 = vsyncpa [#allocation4], 0  ;;  %97 = vperm.xlu0 %963, %v71_v13   ;;  %102 = vperm.xlu1 %964, %v72_v14   ;;  %v73_v17 = vld [vmem:[%s1246_s2 + $0x30] sm:$0xff]  ;;  %v74_v18 = vld [vmem:[%s1246_s2 + $0x38] sm:$0xff]  ;;  %vm312_vm2 = vcmask 523264   ;;  %vm997_vm3 = vmmov 0  }
   0xf   :  { %v43_v16 = vadd.f32 %v42_v15, %v41_v12  ;;  %v264_v21 = vld [vmem:[%s1248_s4] sm:$0xff]  ;;  %v265_v22 = vld [vmem:[%s1248_s4 + $0x8] sm:$0xff]  ;;  %v266_v26 = vld [vmem:[%s1248_s4 + $0x10] sm:$0xff]  ;;  %s999_s28 = smov [#allocation3]  }
  0x10   :  { %v267_v27 = vld [vmem:[%s1248_s4 + $0x18] sm:$0xff]  ;;  %v268_v30 = vld [vmem:[%s1248_s4 + $0x20] sm:$0xff]  ;;  %v269_v31 = vld [vmem:[%s1248_s4 + $0x28] sm:$0xff]  ;;  %s740_s29 = sshll.u32 %s999_s28, 4  ;;  %s741_s29 = int_to_ptr.vmem [resolvable:$true] %s740_s29 }
  0x11   :  { %v45_v19 = vmul.f32 0.16666667, %v43_v16  ;;  %v270_v34 = vld [vmem:[%s1248_s4 + $0x30] sm:$0xff]  ;;  %v271_v35 = vld [vmem:[%s1248_s4 + $0x38] sm:$0xff]  ;;  %v458_v38 = vld [vmem:[%s1250_s6] sm:$0xff]  ;;  %s975_s30 = scalar_lea.vmem %s741_s29, 32  ;;  %p976_p1 = scmp.lt.s32.totalorder %s741_s29, %s741_s29 }
  0x12   :  { %107 = vperm.xlu0 %963, %v73_v17   ;;  %112 = vperm.xlu1 %964, %v74_v18   ;;  %v459_v39 = vld [vmem:[%s1250_s6 + $0x8] sm:$0xff]  ;;  %v460_v41 = vld [vmem:[%s1250_s6 + $0x10] sm:$0xff]  ;;  %v461_v42 = vld [vmem:[%s1250_s6 + $0x18] sm:$0xff] }
  0x13   :  { %v46_v20 = vsub.f32 %v35_v1, %v45_v19  ;;  %v462_v43 = vld [vmem:[%s1250_s6 + $0x20] sm:$0xff]  ;;  %v463_v44 = vld [vmem:[%s1250_s6 + $0x28] sm:$0xff]  ;;  %v464_v45 = vld [vmem:[%s1250_s6 + $0x30] sm:$0xff] }
  0x14   :  { %v465_v46 = vld [vmem:[%s1250_s6 + $0x38] sm:$0xff]  ;;  %v60_v49 = vld [vmem:[%s1245_s1 + $0x8] sm:$0xff]  ;;  %v644_v50 = vld [vmem:[#allocation2] sm:$0x1] }
  0x15   :  { %v47_v23 = vmul.f32 %v46_v20, %v46_v20  ;;  %v61_v51 = vld [vmem:[%s1245_s1 + $0x10] sm:$0xff]  ;;  %v62_v52 = vld [vmem:[%s1245_s1 + $0x18] sm:$0xff]  ;;  %v63_v53 = vld [vmem:[%s1245_s1 + $0x20] sm:$0xff] }
  0x16   :  { %274 = vperm.xlu0 %963, %v264_v21   ;;  %279 = vperm.xlu1 %964, %v265_v22   ;;  %v64_v54 = vld [vmem:[%s1245_s1 + $0x28] sm:$0xff]  ;;  %v65_v55 = vld [vmem:[%s1245_s1 + $0x30] sm:$0xff]  ;;  %v66_v56 = vld [vmem:[%s1245_s1 + $0x38] sm:$0xff] }
  0x17   :  { %v48_v24 = vsel %vm36_vm0, %v47_v23, 0.0  ;;  %v256_v57 = vld [vmem:[%s1247_s3] sm:$0xff] }
  0x18   :  { %v49_v25 = vrot.slane %v48_v24, 4  ;;  %855 = vmatprep.mubr.msk.f32.mxu1 %vm312_vm2, %v256_v57 }
  0x1a   :  { %v50_v28 = vadd.f32 %v49_v25, %v48_v24  ;;  %284 = vperm.xlu0 %963, %v266_v26   ;;  %289 = vperm.xlu1 %964, %v267_v27  }
  0x1c   :  { %v51_v29 = vrot.slane %v50_v28, 2 }
  0x1e   :  { %v52_v32 = vadd.f32 %v51_v29, %v50_v28  ;;  %294 = vperm.xlu0 %963, %v268_v30   ;;  %299 = vperm.xlu1 %964, %v269_v31   ;;  %v257_v30 = vld [vmem:[%s1247_s3 + $0x8] sm:$0xff]  ;;  %v258_v31 = vld [vmem:[%s1247_s3 + $0x10] sm:$0xff] }
  0x20   :  { %v53_v33 = vrot.slane %v52_v32, 1 }
  0x22   :  { %v54_v36 = vadd.f32 %v53_v33, %v52_v32  ;;  %304 = vperm.xlu0 %963, %v270_v34   ;;  %309 = vperm.xlu1 %964, %v271_v35   ;;  %v259_v32 = vld [vmem:[%s1247_s3 + $0x18] sm:$0xff]  ;;  %v260_v33 = vld [vmem:[%s1247_s3 + $0x20] sm:$0xff]  ;;  %v261_v34 = vld [vmem:[%s1247_s3 + $0x28] sm:$0xff] }
  0x23   :  { %v262_v35 = vld [vmem:[%s1247_s3 + $0x30] sm:$0xff] }
  0x24   :  { %v55_v37 = vmul.f32 0.16666667, %v54_v36  ;;  %v263_v36 = vld [vmem:[%s1247_s3 + $0x38] sm:$0xff] }
  0x26   :  { %v56_v40 = vadd.f32 1e-05, %v55_v37  ;;  %468 = vperm.xlu0 %963, %v458_v38   ;;  %473 = vperm.xlu1 %964, %v459_v39   ;;  %v450_v37 = vld [vmem:[%s1249_s5] sm:$0xff] }
  0x28   :  { %965 = vrsqrt.f32 %v56_v40 }
  0x2a   :  { %478 = vperm.xlu0 %963, %v460_v41   ;;  %483 = vperm.xlu1 %964, %v461_v42  }
  0x2e   :  { %488 = vperm.xlu0 %963, %v462_v43   ;;  %493 = vperm.xlu1 %964, %v463_v44  }
  0x32   :  { %v966_v47 = vpop.eup %965  ;;  %498 = vperm.xlu0 %963, %v464_v45   ;;  %503 = vperm.xlu1 %964, %v465_v46  }
  0x33   :  { %v58_v48 = vmul.f32 %v966_v47, %v46_v20 }
  0x35   :  { %825 = vmatprep.subr.msk.mxu0 %vm36_vm0, %v58_v48 }
  0x36   :  { %826 = vmatpush3.msk.msra.mxu0 %vm36_vm0, %v58_v48  ;;  %647 = vperm.xlu0 %963, %v644_v50  }
  0x37   :  { %828 = vmatmul.mubr.msk.f32.vlgmr.msra.gmra.mrb[0].mxu0 %vm115_vm1, %v60_v49 }
  0x38   :  { %830 = vmatprep.mubr.msk.f32.mxu0 %vm115_vm1, %v61_v51 }
  0x3b   :  { %831 = vmatmul.mubr.msk.f32.gmra.mrb[2].mxu0 %vm115_vm1, %v62_v52 }
  0x3c   :  { %833 = vmatprep.mubr.msk.f32.mxu0 %vm115_vm1, %v63_v53 }
  0x3f   :  { %834 = vmatmul.mubr.msk.f32.gmra.mrb[4].mxu0 %vm115_vm1, %v64_v54 }
  0x40   :  { %836 = vmatprep.mubr.msk.f32.mxu0 %vm115_vm1, %v65_v55 }
  0x43   :  { %837 = vmatmul.mubr.msk.f32.gmra.mrb[6].mxu0 %vm115_vm1, %v66_v56 }
  0x44   :  { %883 = vmatprep.mubr.msk.f32.mxu0 %vm312_vm2, %v450_v37 }
  0x84   :  { %v88_v59 = vpop.permute.xlu1 %87 }
  0x85   :  { %v78_v58 = vpop.permute.xlu0 %77 }
  0x88   :  { %v93_v61 = vpop.permute.xlu1 %92 }
  0x89   :  { %v83_v60 = vpop.permute.xlu0 %82 }
  0x8d   :  { %v103_v7 = vpop.permute.xlu1 %102  ;;  %v98_v10 = vpop.permute.xlu0 %97 }
  0x91   :  { %v113_v19 = vpop.permute.xlu1 %112  ;;  %v108_v22 = vpop.permute.xlu0 %107 }
  0x95   :  { %v280_v38 = vpop.permute.xlu1 %279  ;;  %v275_v39 = vpop.permute.xlu0 %274 }
  0x99   :  { %v290_v40 = vpop.permute.xlu1 %289  ;;  %v285_v42 = vpop.permute.xlu0 %284 }
  0x9d   :  { %v300_v51 = vpop.permute.xlu1 %299  ;;  %v295_v54 = vpop.permute.xlu0 %294 }
 0x10a   :  { %v829_v62 = vpop.f32.mrb[0].mxu0 }
 0x10b   :  { %v215_v63 = vadd.f32 %v829_v62, %v83_v60  ;;  %v209_v0 = vpop.f32.mrb[1].mxu0 }
 0x10c   :  { %v210_v1 = vadd.f32 %v209_v0, %v78_v58 }
 0x10d   :  { %v249_v2 = vmax.f32 %v215_v63, 0.0  ;;  %v310_v63 = vpop.permute.xlu1 %309 }
 0x10e   :  { %v248_v3 = vmax.f32 %v210_v1, 0.0  ;;  %v832_v4 = vpop.f32.mrb[2].mxu0 }
 0x10f   :  { %v225_v5 = vadd.f32 %v832_v4, %v93_v61  ;;  %v219_v6 = vpop.f32.mrb[3].mxu0 }
 0x110   :  { %v220_v8 = vadd.f32 %v219_v6, %v88_v59  ;;  %v914_v9 = vpack.c.bf16 %v249_v2, %v248_v3  ;;  %v305_v2 = vpop.permute.xlu0 %304 }
 0x111   :  { %v251_v11 = vmax.f32 %v225_v5, 0.0 }
 0x112   :  { %v250_v12 = vmax.f32 %v220_v8, 0.0  ;;  %v835_v13 = vpop.f32.mrb[4].mxu0  ;;  %915 = vmatprep.subr.bf16.mxu1 %v914_v9 }
 0x113   :  { %v235_v14 = vadd.f32 %v835_v13, %v103_v7  ;;  %v229_v15 = vpop.f32.mrb[5].mxu0  ;;  %917 = vmatpush3.bf16.msra.mxu1 %v914_v9  ;;  %v454_v13 = vld [vmem:[%s1249_s5 + $0x20] sm:$0xff] }
 0x114   :  { %v918_v16 = vpack.c.bf16 %v251_v11, %v250_v12  ;;  %v230_v17 = vadd.f32 %v229_v15, %v98_v10  ;;  %v451_v10 = vld [vmem:[%s1249_s5 + $0x8] sm:$0xff]  ;;  %v452_v11 = vld [vmem:[%s1249_s5 + $0x10] sm:$0xff]  ;;  %v453_v12 = vld [vmem:[%s1249_s5 + $0x18] sm:$0xff] }
 0x115   :  { %v253_v18 = vmax.f32 %v235_v14, 0.0  ;;  %v455_v14 = vld [vmem:[%s1249_s5 + $0x28] sm:$0xff]  ;;  %v456_v15 = vld [vmem:[%s1249_s5 + $0x30] sm:$0xff] }
 0x116   :  { %v252_v20 = vmax.f32 %v230_v17, 0.0  ;;  %v838_v21 = vpop.f32.mrb[6].mxu0  ;;  %919 = vmatprep.subr.bf16.mxu1 %v918_v16  ;;  %v996_v17 = vmov 0.0|0.0  }
 0x117   :  { %v245_v23 = vadd.f32 %v838_v21, %v113_v19  ;;  %v239_v24 = vpop.f32.mrb[7].mxu0  ;;  %921 = vmatpush3.bf16.msra.mxu1 %v918_v16  ;;  %v457_v16 = vld [vmem:[%s1249_s5 + $0x38] sm:$0xff]  ;;  %v474_v19 = vpop.permute.xlu1 %473 }
 0x118   :  { %v922_v25 = vpack.c.bf16 %v253_v18, %v252_v20  ;;  %v240_v26 = vadd.f32 %v239_v24, %v108_v22  ;;  %v998_v18 = vmov 0.0   ;;  %v469_v20 = vpop.permute.xlu0 %468 }
 0x119   :  { %v255_v27 = vmax.f32 %v245_v23, 0.0 }
 0x11a   :  { %v254_v28 = vmax.f32 %v240_v26, 0.0  ;;  %923 = vmatprep.subr.bf16.mxu1 %v922_v25 }
 0x11b   :  { %925 = vmatpush3.bf16.msra.mxu1 %v922_v25  ;;  %v484_v21 = vpop.permute.xlu1 %483 }
 0x11c   :  { %v926_v29 = vpack.c.bf16 %v255_v27, %v254_v28  ;;  %v479_v23 = vpop.permute.xlu0 %478 }
 0x11e   :  { %927 = vmatprep.subr.bf16.mxu1 %v926_v29 }
 0x11f   :  { %929 = vmatpush3.bf16.msra.mxu1 %v926_v29 }
 0x120   :  { %946 = vmatprep.subr.bf16.mxu1 %v996_v17 }
 0x122   :  { %856 = vmatmul.mubr.msk.f32.vlgmr.msra.gmra.mrb[0].mxu1 %vm312_vm2, %v257_v30 }
 0x123   :  { %858 = vmatprep.mubr.msk.f32.mxu1 %vm312_vm2, %v258_v31 }
 0x126   :  { %859 = vmatmul.mubr.msk.f32.gmra.mrb[2].mxu1 %vm312_vm2, %v259_v32  ;;  %v494_v32 = vpop.permute.xlu1 %493 }
 0x127   :  { %861 = vmatprep.mubr.msk.f32.mxu1 %vm312_vm2, %v260_v33 }
 0x12a   :  { %862 = vmatmul.mubr.msk.f32.gmra.mrb[4].mxu1 %vm312_vm2, %v261_v34 }
 0x12b   :  { %864 = vmatprep.mubr.msk.f32.mxu1 %vm312_vm2, %v262_v35  ;;  %v489_v35 = vpop.permute.xlu0 %488 }
 0x12e   :  { %865 = vmatmul.mubr.msk.f32.gmra.mrb[6].mxu1 %vm312_vm2, %v263_v36 }
 0x12f   :  { %911 = vmatprep.mubr.msk.f32.mxu1 %vm997_vm3, %v998_v18 }
 0x1f5   :  { %v857_v41 = vpop.f32.mrb[0].mxu1 }
 0x1f6   :  { %v409_v43 = vadd.f32 %v857_v41, %v280_v38  ;;  %v403_v44 = vpop.f32.mrb[1].mxu1 }
 0x1f7   :  { %v404_v45 = vadd.f32 %v403_v44, %v275_v39  ;;  %v504_v44 = vpop.permute.xlu1 %503 }
 0x1f8   :  { %v443_v46 = vmax.f32 %v409_v43, 0.0 }
 0x1f9   :  { %v442_v47 = vmax.f32 %v404_v45, 0.0  ;;  %v860_v48 = vpop.f32.mrb[2].mxu1 }
 0x1fa   :  { %v419_v49 = vadd.f32 %v860_v48, %v290_v40  ;;  %v413_v50 = vpop.f32.mrb[3].mxu1 }
 0x1fb   :  { %v930_v52 = vpack.c.bf16 %v443_v46, %v442_v47  ;;  %v414_v53 = vadd.f32 %v413_v50, %v285_v42  ;;  %v499_v47 = vpop.permute.xlu0 %498 }
 0x1fc   :  { %v445_v55 = vmax.f32 %v419_v49, 0.0 }
 0x1fd   :  { %v444_v56 = vmax.f32 %v414_v53, 0.0  ;;  %v863_v57 = vpop.f32.mrb[4].mxu1  ;;  %931 = vmatprep.subr.bf16.mxu0 %v930_v52 }
 0x1fe   :  { %v429_v58 = vadd.f32 %v863_v57, %v300_v51  ;;  %v423_v59 = vpop.f32.mrb[5].mxu1  ;;  %933 = vmatpush3.bf16.msra.mxu0 %v930_v52 }
 0x1ff   :  { %v934_v60 = vpack.c.bf16 %v445_v55, %v444_v56  ;;  %v424_v61 = vadd.f32 %v423_v59, %v295_v54  ;;  %v643_v55 = vld [vmem:[%s1251_s7] sm:$0x1]  ;;  %v650_v56 = vlaneseq  ;;  %v648_v59 = vpop.permute.xlu0 %647  ;;  %s971_s7 = scalar_lea.vmem %s741_s29, 16 }
 0x200   :  { %v447_v62 = vmax.f32 %v429_v58, 0.0  ;;  %p972_p0 = scmp.ne.s32.totalorder %s741_s29, %s971_s7  ;;  %p977_p2 = scmp.lt.s32.totalorder %s975_s30, %s971_s7 }
 0x201   :  { %v446_v0 = vmax.f32 %v424_v61, 0.0  ;;  %v866_v1 = vpop.f32.mrb[6].mxu1  ;;  %935 = vmatprep.subr.bf16.mxu0 %v934_v60  ;;  %v651_v57 = vshrl.u32 %v650_v56, 7 }
 0x202   :  { %v439_v3 = vadd.f32 %v866_v1, %v310_v63  ;;  %v433_v4 = vpop.f32.mrb[7].mxu1  ;;  %937 = vmatpush3.bf16.msra.mxu0 %v934_v60  ;;  %p978_p3 = por %p977_p2, %p976_p1 }
 0x203   :  { %v938_v5 = vpack.c.bf16 %v447_v62, %v446_v0  ;;  %v434_v6 = vadd.f32 %v433_v4, %v305_v2  ;;  %v652_v58 = vsub.s32 0, %v651_v57 }
 0x204   :  { %v449_v7 = vmax.f32 %v439_v3, 0.0  ;;  %p979_p4 = pnand %p978_p3, %p972_p0 }
 0x205   :  { %v448_v8 = vmax.f32 %v434_v6, 0.0  ;;  %939 = vmatprep.subr.bf16.mxu0 %v938_v5  ;;  %v653_v60 = vrot.slane %v648_v59, %v652_v58 }
 0x206   :  { %941 = vmatpush3.bf16.msra.mxu0 %v938_v5 }
 0x207   :  { %v942_v9 = vpack.c.bf16 %v449_v7, %v448_v8 }
 0x209   :  { %943 = vmatprep.subr.bf16.mxu0 %v942_v9 }
 0x20a   :  { %945 = vmatpush3.bf16.msra.mxu0 %v942_v9 }
 0x20d   :  { %884 = vmatmul.mubr.msk.f32.vlgmr.msra.gmra.mrb[8].mxu0 %vm312_vm2, %v451_v10 }
 0x20e   :  { %886 = vmatprep.mubr.msk.f32.mxu0 %vm312_vm2, %v452_v11 }
 0x211   :  { %887 = vmatmul.mubr.msk.f32.gmra.mrb[10].mxu0 %vm312_vm2, %v453_v12 }
 0x212   :  { %889 = vmatprep.mubr.msk.f32.mxu0 %vm312_vm2, %v454_v13 }
 0x215   :  { %890 = vmatmul.mubr.msk.f32.gmra.mrb[12].mxu0 %vm312_vm2, %v455_v14 }
 0x216   :  { %892 = vmatprep.mubr.msk.f32.mxu0 %vm312_vm2, %v456_v15 }
 0x219   :  { %893 = vmatmul.mubr.msk.f32.gmra.mrb[14].mxu0 %vm312_vm2, %v457_v16 }
 0x2e0   :  { %v885_v22 = vpop.f32.mrb[8].mxu0 }
 0x2e1   :  { %v602_v24 = vadd.f32 %v885_v22, %v474_v19  ;;  %v596_v25 = vpop.f32.mrb[9].mxu0 }
 0x2e2   :  { %v597_v26 = vadd.f32 %v596_v25, %v469_v20 }
 0x2e3   :  { %v636_v27 = vmax.f32 %v602_v24, 0.0 }
 0x2e4   :  { %v635_v28 = vmax.f32 %v597_v26, 0.0  ;;  %v888_v29 = vpop.f32.mrb[10].mxu0 }
 0x2e5   :  { %v612_v30 = vadd.f32 %v888_v29, %v484_v21  ;;  %v606_v31 = vpop.f32.mrb[11].mxu0 }
 0x2e6   :  { %v947_v33 = vpack.c.bf16 %v636_v27, %v635_v28  ;;  %v607_v34 = vadd.f32 %v606_v31, %v479_v23 }
 0x2e7   :  { %v638_v36 = vmax.f32 %v612_v30, 0.0 }
 0x2e8   :  { %v637_v37 = vmax.f32 %v607_v34, 0.0  ;;  %v891_v38 = vpop.f32.mrb[12].mxu0  ;;  %948 = vmatpush3.bf16.msra.mxu1 %v947_v33 }
 0x2e9   :  { %v622_v39 = vadd.f32 %v891_v38, %v494_v32  ;;  %v616_v40 = vpop.f32.mrb[13].mxu0  ;;  %949 = vmatprep.subr.bf16.mxu1 %v996_v17 }
 0x2ea   :  { %v950_v41 = vpack.c.bf16 %v638_v36, %v637_v37  ;;  %v617_v42 = vadd.f32 %v616_v40, %v489_v35 }
 0x2eb   :  { %v640_v43 = vmax.f32 %v622_v39, 0.0 }
 0x2ec   :  { %v639_v45 = vmax.f32 %v617_v42, 0.0  ;;  %v894_v46 = vpop.f32.mrb[14].mxu0  ;;  %951 = vmatpush3.bf16.msra.mxu1 %v950_v41 }
 0x2ed   :  { %v632_v48 = vadd.f32 %v894_v46, %v504_v44  ;;  %v626_v49 = vpop.f32.mrb[15].mxu0  ;;  %952 = vmatprep.subr.bf16.mxu1 %v996_v17 }
 0x2ee   :  { %v953_v50 = vpack.c.bf16 %v640_v43, %v639_v45  ;;  %v627_v51 = vadd.f32 %v626_v49, %v499_v47 }
 0x2ef   :  { %v642_v52 = vmax.f32 %v632_v48, 0.0 }
 0x2f0   :  { %v641_v53 = vmax.f32 %v627_v51, 0.0  ;;  %954 = vmatpush3.bf16.msra.mxu1 %v953_v50 }
 0x2f1   :  { %955 = vmatprep.subr.bf16.mxu1 %v996_v17 }
 0x2f2   :  { %v956_v54 = vpack.c.bf16 %v642_v52, %v641_v53 }
 0x2f4   :  { %957 = vmatpush3.bf16.msra.mxu1 %v956_v54 }
 0x2f7   :  { %912 = vmatmul.mubr.msk.f32.vlgmr.msra.gmra.mrb[8].mxu1 %vm312_vm2, %v643_v55 }
 0x3ca   :  { %v723_v61 = vpop.f32.mrb[8].mxu1 }
 0x3cb   :  { %v724_v62 = vadd.f32 %v723_v61, %v653_v60  ;;  %v913_v63 = vpop.f32.mrb[9].mxu1 }
 0x3cd   :  { %v774_v0 = vmul.f32 -1.442695, %v724_v62 }
 0x3cf   :  { %967 = vpow2.f32 %v774_v0 }
 0x3d9   :  { %v968_v1 = vpop.eup %967 }
 0x3da   :  { %v730_v2 = vadd.f32 1.0, %v968_v1 }
 0x3dc   :  { %969 = vrcp.f32 %v730_v2 }
 0x3e6   :  { %v970_v3 = vpop.eup %969 }
 0x3e7   :  { %733 = vst [vmem:[#allocation3] sm:$0x1] %v970_v3 }
 0x3e8   :  { %982 = shalt.err (!%p979_p4)
}
 0x3e9   :  { %s983_s12 = scalar_lea.hbm %s1253_s9, 16 }
 0x3ea   :  { %p984_p5 = scmp.ne.s32.totalorder %s1253_s9, %s983_s12  ;;  %p987_p6 = scmp.lt.u32.totalorder %s983_s12, %s1253_s9 }
 0x3ec   :  { %p989_p7 = pnand %p987_p6, %p984_p5 }
 0x3ee   :  { %992 = shalt.err (!%p989_p7)
}
 0x3ef   :  { %743 = dma.vmem_to_hbm [thread:$0]  %s741_s29, 16, %s1253_s9, [#allocation4]  }
 0x3f0   :  { %993 = dma.done.wait [#allocation4], 16  }
 0x3f1   :  { %994 = vsyncadd [#allocation4], 4294967280 }
 0x3f2   :  { %747 = vsyncpa [#allocation4], 1 }

</bundles_post_ra>
